<compile_context>
chip_gen: v5e
topology: v5e:2x2
jax: 0.10.0
libtpu: 0.0.40
codegen_flags: <defaults>
</compile_context>

<pallas_src>
import jax
import jax.numpy as jnp
from jax.experimental import pallas as pl
from jax.experimental.pallas import tpu as pltpu

EPS = 1e-8

_MAX_TILE_ROWS = 8192
# Fallback pipeline-buffer budget when the chip can't be queried (e.g. the
# interpret-mode emulator): stays under v5e's 16 MiB scoped-VMEM default.
_FALLBACK_VMEM_BUDGET = 12 * 1024 * 1024


def _round_up(x, m):
    return ((x + m - 1) // m) * m


def _vmem_plan():
    """(byte budget for the double-buffered pipeline tiles, vmem_limit_bytes | None)."""
    try:
        phys = int(pltpu.get_tpu_info().vmem_capacity_bytes)
        if phys <= 0:
            raise ValueError
    except Exception:  # unknown chip / interpret mode -> conservative default
        return _FALLBACK_VMEM_BUDGET, None
    # <= 1/3 of physical VMEM for the data pipeline (v5e/v6e: 128 MiB phys ->
    # 28 MiB; v7x: 64 MiB phys -> ~21 MiB), headroom left for Mosaic internals.
    budget = min(phys // 3, 28 * 1024 * 1024)
    limit = min(phys - 4 * 1024 * 1024, budget + 8 * 1024 * 1024)
    return budget, limit


def _choose_tile_rows(rows, width, budget_bytes, itemsize=4):
    """Largest sublane-aligned row tile whose double-buffered working set fits."""
    lanes = _round_up(width, 128)  # VMEM tiles pad the lane axis to 128
    # 2-deep pipelining of z/u/w inputs + z_out output, plus the b / ldj
    # per-sample columns (each still occupies a full 128-lane tile).
    bytes_per_row = 2 * (4 * lanes + 2 * 128) * itemsize
    tb = budget_bytes // bytes_per_row
    tb = max(8, min(_MAX_TILE_ROWS, (tb // 8) * 8))
    return min(tb, _round_up(rows, 8))


def _make_kernel(n_pack, dim):
    """Planar-flow kernel for row tiles holding `n_pack` samples of `dim` dims per row."""
    P, D = n_pack, dim

    def segsum(x):  # (TB, P*D) -> (TB, P): per-sample reduction over its D lanes
        if P == 1:
            return jnp.sum(x, axis=1, keepdims=True)
        return jnp.concatenate(
            [jnp.sum(x[:, p * D:(p + 1) * D], axis=1, keepdims=True) for p in range(P)],
            axis=1)

    def expand(x):  # (TB, P) -> broadcastable over (TB, P*D)
        if P == 1:
            return x  # (TB, 1) broadcasts directly against (TB, D)
        return jnp.concatenate(
            [jnp.broadcast_to(x[:, p:p + 1], (x.shape[0], D)) for p in range(P)],
            axis=1)

    def kernel(z_ref, u_ref, w_ref, b_ref, z_out_ref, ldj_ref):
        f32 = jnp.float32
        z = z_ref[...].astype(f32)      # (TB, P*D)
        u = u_ref[...].astype(f32)      # (TB, P*D)
        w = w_ref[...].astype(f32)      # (TB, P*D)
        b = b_ref[...].astype(f32)      # (TB, P)

        uw = segsum(w * u)                       # (TB, P)  == bmm(w, u)
        m_uw = -1.0 + jax.nn.softplus(uw)
        w_norm_sq = segsum(w * w)                # (TB, P)
        # Invertibility correction.  The divide stays on the narrow per-sample
        # column; garbage rows of a ragged final block may hit w_norm_sq == 0,
        # which is row-local and dropped on write-back.
        s = (m_uw - uw) / w_norm_sq              # (TB, P)
        u_hat = u + expand(s) * w                # (TB, P*D)

        wzb = segsum(w * z) + b                  # (TB, P)  == bmm(w, z) + b
        h = jnp.tanh(wzb)

        z_out_ref[...] = (z + u_hat * expand(h)).astype(z_out_ref.dtype)

        # psi.u_hat = (1 - h^2) * (w.u_hat) and w.u_hat == m_uw exactly
        # (w.u_hat = uw + (m_uw - uw) * ||w||^2 / ||w||^2), so skip the
        # full-width multiply + cross-lane reduction per tile.
        ldj_ref[...] = jnp.log(jnp.abs(1.0 + (1.0 - h * h) * m_uw) + EPS
                               ).astype(ldj_ref.dtype)

    return kernel


def planar_flow(zk, u, w, b, *, tile_rows=None, io_dtype=None):
    """
    zk : (B, D), u : (B, D, 1), w : (B, 1, D), b : (B, 1, 1)
    returns (z, log_det_jacobian) with shapes (B, D), (B,).

    io_dtype: optional narrower I/O dtype (e.g. jnp.bfloat16) for a
    bandwidth-bound flow stack; math stays f32 inside the kernel.
    """
    B, D = zk.shape
    assert u.shape == (B, D, 1) and w.shape == (B, 1, D) and b.shape == (B, 1, 1), \
        "Dimensions must match supplied arguments!"

    # Squeeze the PyTorch singleton axes -- free, layout-preserving reshapes.
    z2, u2, w2, b2 = zk, u[:, :, 0], w[:, 0, :], b[:, 0, :]
    if io_dtype is not None:
        z2, u2, w2, b2 = (x.astype(io_dtype) for x in (z2, u2, w2, b2))
    out_dtype = z2.dtype

    # Lane packing: put P = 128 // D samples side by side on the 128-lane axis
    # (a free row-major reshape) so vregs / VMEM tiles / stores are lane-dense.
    P = 1
    if D < 128 and 128 % D == 0 and B % (128 // D) == 0:
        P = 128 // D
    rows, width = B // P, P * D
    if P > 1:
        z2 = z2.reshape(rows, width)
        u2 = u2.reshape(rows, width)
        w2 = w2.reshape(rows, width)
        b2 = b2.reshape(rows, P)

    budget, vmem_limit = _vmem_plan()
    tb = tile_rows if tile_rows is not None else _choose_tile_rows(rows, width, budget)
    assert tb % 8 == 0 or tb == rows, \
        "tile_rows must be a multiple of 8 (sublane) or equal the (packed) batch"

    grid = (pl.cdiv(rows, tb),)  # ragged final block: no wrapper-side padding

    cost = pl.CostEstimate(
        flops=int(12 * B * D),
        transcendentals=int(4 * B),
        bytes_accessed=int(z2.dtype.itemsize * 4 * B * D + 8 * B),
    )

    cp_kwargs = dict(dimension_semantics=("parallel",))
    # NOTE(v7x): "parallel" lets Mosaic shard the batch axis across the two
    # TensorCores; keep >= 2 grid steps per chip for core balance.
    if vmem_limit is not None:
        cp_kwargs["vmem_limit_bytes"] = int(vmem_limit)

    z_out, ldj = pl.pallas_call(
        _make_kernel(P, D),
        out_shape=(
            jax.ShapeDtypeStruct((rows, width), out_dtype),
            jax.ShapeDtypeStruct((rows, P), jnp.float32),   # keep log-det in f32
        ),
        grid=grid,
        in_specs=[
            pl.BlockSpec((tb, width), lambda i: (i, 0)),
            pl.BlockSpec((tb, width), lambda i: (i, 0)),
            pl.BlockSpec((tb, width), lambda i: (i, 0)),
            pl.BlockSpec((tb, P), lambda i: (i, 0)),
        ],
        out_specs=(
            pl.BlockSpec((tb, width), lambda i: (i, 0)),
            pl.BlockSpec((tb, P), lambda i: (i, 0)),
        ),
        compiler_params=pltpu.CompilerParams(**cp_kwargs),
        cost_estimate=cost,
    )(z2, u2, w2, b2)

    # Free reshapes back to the PyTorch output shapes (no HBM copies).
    return z_out.reshape(B, D), ldj.reshape(B)


def planar_flow_ref(zk, u, w, b):
    """Pure-JAX mirror of PlanarFlow.forward.  The (1,D)x(D,1) bmms are written
    as explicit sum-of-products so the reference stays in plain f32 regardless
    of the backend's default matmul precision."""
    u2, w2, b1 = u[:, :, 0], w[:, 0, :], b[:, 0, 0]
    uw = jnp.sum(w2 * u2, axis=1)                                   # bmm(w, u)
    m_uw = -1.0 + jax.nn.softplus(uw)
    w_norm_sq = jnp.sum(w2 ** 2, axis=1)
    u_hat = u2 + ((m_uw - uw)[:, None] * w2) / w_norm_sq[:, None]
    wzb = jnp.sum(w2 * zk, axis=1) + b1                              # bmm(w, z) + b
    h = jnp.tanh(wzb)
    z = zk + u_hat * h[:, None]
    psi_u_hat = jnp.sum(w2 * (1.0 - h ** 2)[:, None] * u_hat, axis=1)  # bmm(psi, u_hat)
    log_det_jacobian = jnp.log(jnp.abs(1.0 + psi_u_hat) + EPS)
    return z, log_det_jacobian


def _make_inputs(key, B, D):
    kz, ku, kw, kb = jax.random.split(key, 4)
    zk = jax.random.normal(kz, (B, D), dtype=jnp.float32)
    u = jax.random.normal(ku, (B, D, 1), dtype=jnp.float32)
    w = jax.random.normal(kw, (B, 1, D), dtype=jnp.float32)
    b = jax.random.normal(kb, (B, 1, 1), dtype=jnp.float32)
    return zk, u, w, b


def _check_case(name, B, D, key, tile_rows=None):
    zk, u, w, b = _make_inputs(key, B, D)
    z_out, ldj = planar_flow(zk, u, w, b, tile_rows=tile_rows)
    jax.block_until_ready((z_out, ldj))
    z_ref, ldj_ref = planar_flow_ref(zk, u, w, b)
    assert z_out.shape == (B, D) and ldj.shape == (B,)
    # z: values are O(1..20) built from 32-term f32 dots; allow reduction-order ulps.
    assert bool(jnp.allclose(z_out, z_ref, atol=2e-5, rtol=1e-4)), f"z mismatch ({name})"
    # ldj = log(|1 + psi.u_hat| + EPS): as |1 + psi.u_hat| -> 0 the log amplifies
    # last-ulp differences between any two valid fp evaluation orders without
    # bound, so compare the well-conditioned log-argument directly and fold the
    # log's condition number (1 / arg) into the log-domain tolerance.
    a, a_ref = jnp.exp(ldj), jnp.exp(ldj_ref)
    assert bool(jnp.allclose(a, a_ref, atol=5e-5, rtol=1e-4)), \
        f"log_det argument mismatch ({name})"
    assert bool(jnp.all(jnp.abs(ldj - ldj_ref) <= 1e-4 + 5e-5 / a_ref)), \
        f"log_det mismatch ({name})"


if __name__ == "__main__":
    root = jax.random.PRNGKey(0)

    # Small case matching the module's docstring shapes (batch=2, z_size=32).
    _check_case("small", 2, 32, jax.random.fold_in(root, 0))

    # Ragged multi-tile batch: B not divisible by 128//D -> un-packed kernel,
    # cdiv grid with a partial final block (13 valid rows in the last tile).
    _check_case("ragged", 1037, 32, jax.random.fold_in(root, 1), tile_rows=512)

    # Lane-packed path (D < 128, B divisible by 128//D): 4 samples per 128-lane
    # row, multiple pipelined grid steps.
    _check_case("packed", 4096, 32, jax.random.fold_in(root, 2), tile_rows=256)

    print("KERNEL_OK")
</pallas_src>

<mosaic_0001>
module attributes {stable_mosaic.version = 11 : i64} {
  func.func @kernel(%arg0: i32, %arg1: memref<8x32xf32, #tpu.memory_space<vmem>>, %arg2: memref<8x32xf32, #tpu.memory_space<vmem>>, %arg3: memref<8x32xf32, #tpu.memory_space<vmem>>, %arg4: memref<8x1xf32, #tpu.memory_space<vmem>>, %arg5: memref<8x32xf32, #tpu.memory_space<vmem>>, %arg6: memref<8x1xf32, #tpu.memory_space<vmem>>) attributes {dimension_semantics = [#tpu.dimension_semantics<parallel>], iteration_bounds = array<i64: 1>, scalar_prefetch = 0 : i64, scratch_operands = 0 : i64, tpu.core_type = #tpu.core_type<tc>, window_params = [{transform_indices = @transform_0, window_bounds = array<i64: 8, 32>}, {transform_indices = @transform_1, window_bounds = array<i64: 8, 32>}, {transform_indices = @transform_2, window_bounds = array<i64: 8, 32>}, {transform_indices = @transform_3, window_bounds = array<i64: 8, 1>}, {transform_indices = @transform_4, window_bounds = array<i64: 8, 32>}, {transform_indices = @transform_5, window_bounds = array<i64: 8, 1>}]} {
    %c0 = arith.constant 0 : index
    %c0_0 = arith.constant 0 : index
    %0 = vector.load %arg1[%c0, %c0_0] : memref<8x32xf32, #tpu.memory_space<vmem>>, vector<8x32xf32>
    %c0_1 = arith.constant 0 : index
    %c0_2 = arith.constant 0 : index
    %1 = vector.load %arg2[%c0_1, %c0_2] : memref<8x32xf32, #tpu.memory_space<vmem>>, vector<8x32xf32>
    %c0_3 = arith.constant 0 : index
    %c0_4 = arith.constant 0 : index
    %2 = vector.load %arg3[%c0_3, %c0_4] : memref<8x32xf32, #tpu.memory_space<vmem>>, vector<8x32xf32>
    %c0_5 = arith.constant 0 : index
    %c0_6 = arith.constant 0 : index
    %3 = vector.load %arg4[%c0_5, %c0_6] : memref<8x1xf32, #tpu.memory_space<vmem>>, vector<8x1xf32>
    %4 = arith.mulf %2, %1 : vector<8x32xf32>
    %cst = arith.constant dense<0.000000e+00> : vector<8xf32>
    %5 = vector.multi_reduction <add>, %4, %cst [1] : vector<8x32xf32> to vector<8xf32>
    %6 = vector.shape_cast %5 : vector<8xf32> to vector<8x1xf32>
    %cst_7 = arith.constant 0.000000e+00 : f32
    %7 = vector.broadcast %cst_7 : f32 to vector<8x1xf32>
    %8 = arith.maximumf %6, %7 : vector<8x1xf32>
    %9 = vector.broadcast %cst_7 : f32 to vector<8x1xf32>
    %10 = arith.subf %6, %9 : vector<8x1xf32>
    %11 = arith.cmpf one, %10, %10 : vector<8x1xf32>
    %12 = vector.broadcast %cst_7 : f32 to vector<8x1xf32>
    %13 = arith.addf %6, %12 : vector<8x1xf32>
    %14 = math.absf %10 : vector<8x1xf32>
    %cst_8 = arith.constant 0.000000e+00 : f32
    %15 = vector.broadcast %cst_8 : f32 to vector<8x1xf32>
    %16 = arith.subf %15, %14 : vector<8x1xf32>
    %17 = math.exp %16 : vector<8x1xf32>
    %18 = math.log1p %17 : vector<8x1xf32>
    %19 = arith.addf %8, %18 : vector<8x1xf32>
    %20 = arith.select %11, %13, %19 : vector<8x1xi1>, vector<8x1xf32>
    %cst_9 = arith.constant -1.000000e+00 : f32
    %21 = vector.broadcast %cst_9 : f32 to vector<8x1xf32>
    %22 = arith.addf %21, %20 : vector<8x1xf32>
    %23 = arith.mulf %2, %2 : vector<8x32xf32>
    %cst_10 = arith.constant dense<0.000000e+00> : vector<8xf32>
    %24 = vector.multi_reduction <add>, %23, %cst_10 [1] : vector<8x32xf32> to vector<8xf32>
    %25 = vector.shape_cast %24 : vector<8xf32> to vector<8x1xf32>
    %26 = arith.subf %22, %6 : vector<8x1xf32>
    %27 = arith.divf %26, %25 : vector<8x1xf32>
    %28 = vector.broadcast %27 : vector<8x1xf32> to vector<8x32xf32>
    %29 = arith.mulf %28, %2 : vector<8x32xf32>
    %30 = arith.addf %1, %29 : vector<8x32xf32>
    %31 = arith.mulf %2, %0 : vector<8x32xf32>
    %cst_11 = arith.constant dense<0.000000e+00> : vector<8xf32>
    %32 = vector.multi_reduction <add>, %31, %cst_11 [1] : vector<8x32xf32> to vector<8xf32>
    %33 = vector.shape_cast %32 : vector<8xf32> to vector<8x1xf32>
    %34 = arith.addf %33, %3 : vector<8x1xf32>
    %35 = math.tanh %34 : vector<8x1xf32>
    %36 = vector.broadcast %35 : vector<8x1xf32> to vector<8x32xf32>
    %37 = arith.mulf %30, %36 : vector<8x32xf32>
    %38 = arith.addf %0, %37 : vector<8x32xf32>
    %c0_12 = arith.constant 0 : index
    %c0_13 = arith.constant 0 : index
    %39 = vector.load %arg5[%c0_12, %c0_13] : memref<8x32xf32, #tpu.memory_space<vmem>>, vector<8x32xf32>
    tpu.vector_store %arg5[%c0_12, %c0_13], %38 {strides = array<i32>} : memref<8x32xf32, #tpu.memory_space<vmem>>, vector<8x32xf32>,
    %40 = arith.mulf %35, %35 : vector<8x1xf32>
    %cst_14 = arith.constant 1.000000e+00 : f32
    %41 = vector.broadcast %cst_14 : f32 to vector<8x1xf32>
    %42 = arith.subf %41, %40 : vector<8x1xf32>
    %43 = arith.mulf %42, %22 : vector<8x1xf32>
    %cst_15 = arith.constant 1.000000e+00 : f32
    %44 = vector.broadcast %cst_15 : f32 to vector<8x1xf32>
    %45 = arith.addf %44, %43 : vector<8x1xf32>
    %46 = math.absf %45 : vector<8x1xf32>
    %cst_16 = arith.constant 9.99999993E-9 : f32
    %47 = vector.broadcast %cst_16 : f32 to vector<8x1xf32>
    %48 = arith.addf %46, %47 : vector<8x1xf32>
    %49 = math.log %48 : vector<8x1xf32>
    %c0_17 = arith.constant 0 : index
    %c0_18 = arith.constant 0 : index
    %50 = vector.load %arg6[%c0_17, %c0_18] : memref<8x1xf32, #tpu.memory_space<vmem>>, vector<8x1xf32>
    tpu.vector_store %arg6[%c0_17, %c0_18], %49 {strides = array<i32>} : memref<8x1xf32, #tpu.memory_space<vmem>>, vector<8x1xf32>,
    return
  }
  func.func @transform_0(%arg0: i32) -> (i32, i32) {
    %c0_i32 = arith.constant 0 : i32
    %c0_i32_0 = arith.constant 0 : i32
    return %arg0, %c0_i32 : i32, i32
  }
  func.func @transform_1(%arg0: i32) -> (i32, i32) {
    %c0_i32 = arith.constant 0 : i32
    %c0_i32_0 = arith.constant 0 : i32
    return %arg0, %c0_i32 : i32, i32
  }
  func.func @transform_2(%arg0: i32) -> (i32, i32) {
    %c0_i32 = arith.constant 0 : i32
    %c0_i32_0 = arith.constant 0 : i32
    return %arg0, %c0_i32 : i32, i32
  }
  func.func @transform_3(%arg0: i32) -> (i32, i32) {
    %c0_i32 = arith.constant 0 : i32
    %c0_i32_0 = arith.constant 0 : i32
    return %arg0, %c0_i32 : i32, i32
  }
  func.func @transform_4(%arg0: i32) -> (i32, i32) {
    %c0_i32 = arith.constant 0 : i32
    %c0_i32_0 = arith.constant 0 : i32
    return %arg0, %c0_i32 : i32, i32
  }
  func.func @transform_5(%arg0: i32) -> (i32, i32) {
    %c0_i32 = arith.constant 0 : i32
    %c0_i32_0 = arith.constant 0 : i32
    return %arg0, %c0_i32 : i32, i32
  }
}

</mosaic_0001>

<bundles_post_ra>
// kernel: tpu_custom_call.1
= control target key start
LH: loop header
LB: loop body
LE: loop exit
PB: predicated region body
PF: predicated region fallthrough
CT: control target
= control target key end

     0   :  { %11 = vsyncpa [#allocation3], 0  ;;  %s317_s0 = inlined_call_operand.vmem [shape: f32[2,32], index: 0, kind: input, shape index: {}]   ;;  %s318_s1 = inlined_call_operand.hbm [shape: f32[2,32], index: 1, kind: input, shape index: {}]   ;;  %s319_s2 = inlined_call_operand.vmem [shape: f32[2,32], index: 2, kind: input, shape index: {}]   ;;  %s320_s3 = inlined_call_operand.vmem [shape: f32[2,1], index: 3, kind: input, shape index: {}]   ;;  %s321_s4 = inlined_call_operand.hbm [shape: f32[2,32], index: 4, kind: output, shape index: {0}]   ;;  %s322_s5 = inlined_call_operand.vmem [shape: f32[2,1], index: 5, kind: output, shape index: {1}]  }
   0x1   :  { %12 = vsyncpa [#allocation4], 0 }
   0x2   :  { %18 = vsyncadd [#allocation3], 96  ;;  %s19_s20 = sshll.u32 %s318_s1, 4  ;;  %s239_s21 = smov [#allocation2]   ;;  %s20_s20 = int_to_ptr.hbm [resolvable:$true] %s19_s20 }
   0x3   :  { %s21_s22 = sshll.u32 %s239_s21, 4  ;;  %s240_s23 = smov 32   ;;  %s22_s22 = int_to_ptr.vmem [resolvable:$true] %s21_s22 }
   0x4   :  { %s241_s24 = smov 2  }
   0x5   :  { %27 = dma.hbm_to_vmem [thread:$0]  %s20_s20, 32, %s22_s22, [#allocation3], %s240_s23, %s240_s23, %s241_s24  }
   0x6   :  { %235 = dma.done.wait [#allocation3], 128  }
   0x7   :  { %236 = vsyncadd [#allocation3], 4294967168  ;;  %v283_v0 = vld [vmem:[%s317_s0] sm:$0xff]  ;;  %vm41_vm0 = vcmask 261120   ;;  %v242_v9 = vmov 0   ;;  %vm108_vm3 = vcmask 7168  }
   0x8   :  { %v288_v1 = vld [vmem:[%s319_s2] sm:$0xff]  ;;  %175 = vset.pattern.permute.xlu1 %v242_v9  ;;  %176 = vset.pattern.permute.xlu0 %v242_v9 }
   0x9   :  { %v86_v2 = vmul.f32 %v288_v1, %v283_v0  ;;  %v64_v3 = vmul.f32 %v288_v1, %v288_v1  ;;  %v294_v4 = vld [vmem:[#allocation2] sm:$0xff] }
   0xa   :  { %v40_v7 = vmul.f32 %v288_v1, %v294_v4  ;;  %v39_v10 = vld [vmem:[%s320_s3] sm:$0xff] }
   0xb   :  { %v87_v5 = vsel %vm41_vm0, %v86_v2, 0.0  ;;  %v65_v6 = vsel %vm41_vm0, %v64_v3, 0.0 }
   0xc   :  { %88 = vadd.xlane.f32.xlu0 %v87_v5  ;;  %66 = vadd.xlane.f32.xlu1 %v65_v6  ;;  %v42_v8 = vsel %vm41_vm0, %v40_v7, 0.0 }
  0x14   :  { %43 = vadd.xlane.f32.xlu0 %v42_v8 }
  0x7f   :  { %v89_v11 = vpop.xlane.xlu0 %88  ;;  %v67_v40 = vpop.xlane.xlu1 %66 }
  0x80   :  { %v90_v12 = vadd.f32 %v89_v11, %v39_v10  ;;  %vm74_vm4 = vweird.f32 %v67_v40  ;;  %v80_v45 = vand.u32 2147483648, %v67_v40  ;;  %v78_v47 = vand.u32 2147483647, %v67_v40 }
  0x82   :  { %177 = vtanh.f32 %v90_v12  ;;  %v81_v48 = vor.u32 1.1754944e-38, %v80_v45  ;;  %vm79_vm7 = vcmp.eq.f32.partialorder %v78_v47, 8.507059e+37 }
  0x87   :  { %v44_v13 = vpop.xlane.xlu0 %43 }
  0x88   :  { %v178_v14 = vpop.eup %177  ;;  %v48_v15 = vand.u32 2147483647, %v44_v13  ;;  %v45_v25 = vmax.f32 %v44_v13, 0.0  ;;  %vm46_vm2 = vcmp.ne.f32.partialorder %v44_v13, %v44_v13 }
  0x89   :  { %94 = vperm.xlu1 %175, %v178_v14   ;;  %v100_v27 = vmul.f32 %v178_v14, %v178_v14 }
  0x8a   :  { %v49_v16 = vsub.f32 0.0, %v48_v15 }
  0x8b   :  { %v101_v31 = vsub.f32 1.0, %v100_v27 }
  0x8c   :  { %v50_v17 = vmul.f32 1.442695, %v49_v16 }
  0x8e   :  { %179 = vpow2.f32 %v50_v17 }
  0x94   :  { %v180_v18 = vpop.eup %179 }
  0x95   :  { %v52_v19 = vadd.f32 1.0, %v180_v18  ;;  %v55_v20 = vmul.f32 -0.5, %v180_v18  ;;  %v58_v22 = vand.u32 2147483647, %v180_v18 }
  0x97   :  { %181 = vlog2.f32 %v52_v19  ;;  %v56_v21 = vadd.f32 1.0, %v55_v20  ;;  %vm59_vm1 = vcmp.lt.f32.partialorder %v58_v22, 0.0004427343 }
  0x99   :  { %v57_v23 = vmul.f32 %v180_v18, %v56_v21 }
  0x9d   :  { %v182_v24 = vpop.eup %181 }
  0x9e   :  { %v54_v26 = vmul.f32 0.6931472, %v182_v24 }
  0xa0   :  { %v60_v28 = vsel %vm59_vm1, %v57_v23, %v54_v26 }
  0xa1   :  { %v61_v29 = vadd.f32 %v60_v28, %v45_v25 }
  0xa3   :  { %v62_v30 = vsel %vm46_vm2, %v44_v13, %v61_v29 }
  0xa4   :  { %v63_v32 = vadd.f32 -1.0, %v62_v30 }
  0xa6   :  { %v68_v33 = vsub.f32 %v63_v32, %v44_v13  ;;  %v102_v34 = vmul.f32 %v101_v31, %v63_v32 }
  0xa8   :  { %v103_v35 = vadd.f32 1.0, %v102_v34 }
  0xaa   :  { %v104_v36 = vand.u32 2147483647, %v103_v35 }
  0xac   :  { %v105_v37 = vadd.f32 1e-08, %v104_v36 }
  0xae   :  { %183 = vlog2.f32 %v105_v37 }
  0xaf   :  { %185 = vrcp.f32 %v67_v40 }
  0xb4   :  { %v184_v38 = vpop.eup %183 }
  0xb5   :  { %v107_v39 = vmul.f32 0.6931472, %v184_v38  ;;  %v186_v41 = vpop.eup %185 }
  0xb6   :  { %v70_v42 = vmul.f32 %v186_v41, %v67_v40  ;;  %vm75_vm5 = vweird.f32 %v186_v41 }
  0xb7   :  { %109 = vst.msk [vmem:[#allocation6] sm:$0xff] %vm108_vm3, %v107_v39  ;;  %vm76_vm6 = vmor %vm74_vm4, %vm75_vm5 }
  0xb8   :  { %v71_v43 = vsub.f32 1.0, %v70_v42 }
  0xba   :  { %v72_v44 = vmul.f32 %v186_v41, %v71_v43 }
  0xbc   :  { %v73_v46 = vadd.f32 %v186_v41, %v72_v44 }
  0xbe   :  { %v77_v49 = vsel %vm76_vm6, %v186_v41, %v73_v46 }
  0xbf   :  { %v82_v50 = vsel %vm79_vm7, %v81_v48, %v77_v49 }
  0xc0   :  { %v83_v51 = vmul.f32 %v82_v50, %v68_v33 }
  0xc2   :  { %v84_v52 = vmul.f32 %v83_v51, %v288_v1 }
  0xc4   :  { %v85_v53 = vadd.f32 %v84_v52, %v294_v4 }
  0xfb   :  { %v95_v54 = vpop.permute.xlu1 %94 }
  0xfc   :  { %v97_v55 = vmul.f32 %v95_v54, %v85_v53 }
  0xfe   :  { %v98_v56 = vadd.f32 %v97_v55, %v283_v0 }
 0x100   :  { %99 = vst.msk [vmem:[#allocation5] sm:$0xff] %vm41_vm0, %v98_v56 }
 0x101   :  { %113 = vsyncadd [#allocation4], 96  ;;  %s116_s29 = sshll.u32 %s321_s4, 4  ;;  %v141_v57 = vld [vmem:[#allocation6] sm:$0x3]  ;;  %s243_s30 = smov [#allocation5]   ;;  %s117_s29 = int_to_ptr.hbm [resolvable:$true] %s116_s29 }
 0x102   :  { %s114_s6 = sshll.u32 %s243_s30, 4  ;;  %142 = vst [vmem:[%s322_s5] sm:$0x3] %v141_v57  ;;  %s115_s6 = int_to_ptr.vmem [resolvable:$true] %s114_s6 }
 0x103   :  { %122 = dma.vmem_to_hbm [thread:$0]  %s115_s6, 32, %s117_s29, [#allocation4], %s240_s23, %s240_s23, %s241_s24  }
 0x104   :  { %237 = dma.done.wait [#allocation4], 128  }
 0x105   :  { %238 = vsyncadd [#allocation4], 4294967168 }
 0x106   :  { %164 = vsyncpa [#allocation3], 1 }
 0x107   :  { %165 = vsyncpa [#allocation4], 1 }

</bundles_post_ra>
